<compile_context>
chip_gen: v7x
topology: tpu7x:2x2x1
jax: 0.10.0
libtpu: 0.0.40
codegen_flags: <defaults>
</compile_context>

<pallas_src>
import functools
import math

import jax
import jax.numpy as jnp
from jax.experimental import pallas as pl
from jax.experimental.pallas import tpu as pltpu

_LANE = 128
_TM_MAX = 1024                  # max batch rows per step (keeps M grid at 1 -> weight streamed once)
_TN_MAX = 256                   # N tile when target_window is tiled (multiple of 128)
_TN_FULL_MAX = 512              # up to this width, one full-width N block (zero N padding)
_TK_HARD_CAP = 8192             # upper bound on the K tile
_W_BUFFERS = 3                  # weight BlockSpec pipeline depth when K is tiled
_VMEM_WORKSET_BUDGET = 20 * 1024 * 1024   # per-step working set target (fits every generation)
_VMEM_LIMIT_BYTES = 32 * 1024 * 1024      # scoped-VMEM limit (headroom under v7x 64 MiB physical)


# ------------------------------ planning helpers ------------------------------ #

def _round_up(x: int, m: int) -> int:
    return ((x + m - 1) // m) * m


def _largest_tile_128(padded: int, cap: int, min_blocks: int = 1) -> int:
    """Largest multiple of 128 that divides `padded` (itself a multiple of 128), is <= cap
    and, when possible, leaves at least `min_blocks` blocks."""
    cands = [t for t in range(_LANE, min(cap, padded) + 1, _LANE) if padded % t == 0]
    good = [t for t in cands if padded // t >= min_blocks]
    return max(good) if good else max(cands)


def _k_tile_cap(rows: int, cols: int, x_bytes: int, w_bytes: int, out_bytes: int) -> int:
    """Largest K tile (multiple of 128) whose per-step working set fits the VMEM budget.
    rows/cols = output rows/cols produced per grid step."""
    fixed = 2 * rows * cols * out_bytes + rows * cols * 4 + 2 * cols * 4      # out dbuf + f32 acc + bias
    per_k = 2 * rows * x_bytes + _W_BUFFERS * cols * w_bytes                  # x dbuf + weight buffers
    cap = max(_VMEM_WORKSET_BUDGET - fixed, per_k * _LANE) // per_k
    return int(min(max(_LANE, (cap // _LANE) * _LANE), _TK_HARD_CAP))


def _plan_n(tw: int):
    """(tn, n_pad) for the shared head's output / weight-row dimension."""
    if tw % _LANE == 0 and tw >= 2 * _LANE:
        # Lane-aligned already: tile into >=2 blocks (engages both v7x TensorCores), no padding.
        return _largest_tile_128(tw, _TN_MAX, min_blocks=2), tw
    if tw <= _TN_FULL_MAX:
        # Single full-width block: zero padded weight columns, only the (tiny) output stores are masked.
        return tw, tw
    # Large, misaligned target_window: pad to the next lane multiple and tile (<128 wasted lanes).
    # TODO(synk): pre-pad the weight once at load time in deployment (this adds one pad pass).
    n_pad = _round_up(tw, _LANE)
    return _largest_tile_128(n_pad, _TN_MAX, min_blocks=2), n_pad


def _pick_v_blk(n_vars: int, per_var_bytes: int) -> int:
    """Vars per grid step for the individual head: a divisor of n_vars that fits the VMEM
    budget, preferring >=2 var-blocks so both v7x TensorCores are engaged."""
    divs = [v for v in range(1, n_vars + 1) if n_vars % v == 0]
    fit = [v for v in divs if v * per_var_bytes <= _VMEM_WORKSET_BUDGET] or [1]
    multi = [v for v in fit if n_vars // v >= 2]
    return max(multi) if multi else max(fit)


# ----------------------------------- kernels ----------------------------------- #

def _shared_head_kernel(x_ref, w_ref, b_ref, o_ref, acc_ref):
    """One (i, j, k) step of out = x @ W.T + b, with W kept in PyTorch [out, in] layout.

    x_ref: [tm, tk]   w_ref: [tn, tk]   b_ref: [1, tn]
    o_ref: [tm, tn]   acc_ref: [tm, tn] f32 scratch (resident across the K axis)
    """
    k = pl.program_id(2)

    @pl.when(k == 0)
    def _init():
        # Bias folded into the accumulator init (saves a full-tile add in the epilogue).
        acc_ref[...] = jnp.broadcast_to(b_ref[...].astype(jnp.float32), acc_ref.shape)

    x = x_ref[...]
    w = w_ref[...].astype(x.dtype)           # bf16 weights upcast in VMEM; the HBM stream stays narrow
    acc_ref[...] += jax.lax.dot_general(
        x, w,
        dimension_numbers=(((1,), (1,)), ((), ())),   # contract both last dims == x @ w.T
        preferred_element_type=jnp.float32)

    @pl.when(k == pl.num_programs(2) - 1)
    def _store():
        o_ref[...] = acc_ref[...].astype(o_ref.dtype)


def _individual_head_kernel(x_ref, w_ref, b_ref, o_ref, acc_ref):
    """One (v, k) step of per-variable out[v] = x[v] @ W[v].T + b[v].

    x_ref: [v_blk, bs, tk]   w_ref: [v_blk, tw, tk]   b_ref: [v_blk, 1, tw]
    o_ref: [v_blk, bs, tw]   acc_ref: [v_blk, bs, tw] f32 scratch
    """
    k = pl.program_id(1)

    @pl.when(k == 0)
    def _init():
        acc_ref[...] = jnp.broadcast_to(b_ref[...].astype(jnp.float32), acc_ref.shape)

    x = x_ref[...]
    w = w_ref[...].astype(x.dtype)
    acc_ref[...] += jax.lax.dot_general(
        x, w,
        dimension_numbers=(((2,), (2,)), ((0,), (0,))),   # batch over vars, contract K
        preferred_element_type=jnp.float32)

    @pl.when(k == pl.num_programs(1) - 1)
    def _store():
        o_ref[...] = acc_ref[...].astype(o_ref.dtype)


# ---------------------------------- wrappers ----------------------------------- #

@functools.partial(jax.jit, static_argnames=("k_cap_override",))
def flatten_head_shared(x, weight, bias, *, k_cap_override=None):
    """individual=False: Flatten(start_dim=1) -> Linear(nf, target_window) -> Dropout(0).

    x      : [bs, n_vars, d_model, patch_num]
    weight : [target_window, nf]  PyTorch Linear layout (pass bf16 to halve weight HBM traffic)
    bias   : [target_window]
    returns: [bs, target_window] in x.dtype
    """
    bs = x.shape[0]
    nf = math.prod(x.shape[1:])
    tw = weight.shape[0]
    assert weight.shape[1] == nf, (weight.shape, nf)
    x_bytes = jnp.dtype(x.dtype).itemsize
    w_bytes = jnp.dtype(weight.dtype).itemsize

    # ---- tile plan (static under jit) ----
    tn, n_pad = _plan_n(tw)
    if bs <= _TM_MAX:
        tm, m_pad = bs, bs                               # single full-dim M block: weight streamed once
    else:
        tm, m_pad = _TM_MAX, _round_up(bs, _TM_MAX)
    k_cap = (k_cap_override if k_cap_override is not None
             else _k_tile_cap(tm, tn, x_bytes, w_bytes, x_bytes))
    if nf <= k_cap:
        tk, k_pad = nf, nf                               # single full-dim K block, no padding
    else:
        k_pad = _round_up(nf, _LANE)
        tk = _largest_tile_128(k_pad, k_cap)

    # ---- operand prep (weight stays in [tw, nf] layout; padded only when it must be tiled) ----
    x2 = x.reshape(bs, nf)                               # free reshape
    if (m_pad, k_pad) != (bs, nf):
        x2 = jnp.pad(x2, ((0, m_pad - bs), (0, k_pad - nf)))
    w = weight
    if (n_pad, k_pad) != (tw, nf):
        # TODO(synk): in deployment pre-pad the weight once at load time; this is an extra
        # HBM pass over the dominant tensor.
        w = jnp.pad(w, ((0, n_pad - tw), (0, k_pad - nf)))
    b2 = bias.reshape(1, tw)
    if n_pad != tw:
        b2 = jnp.pad(b2, ((0, 0), (0, n_pad - tw)))

    k_blocks = k_pad // tk
    grid = (m_pad // tm, n_pad // tn, k_blocks)          # reduction axis last

    w_spec = pl.BlockSpec((tn, tk), lambda i, j, k: (j, k))
    if k_blocks >= 2:                                    # deeper weight pipelining hides DMA latency
        w_spec = pl.BlockSpec((tn, tk), lambda i, j, k: (j, k),
                              pipeline_mode=pl.Buffered(_W_BUFFERS))

    cost = pl.CostEstimate(
        flops=2 * m_pad * n_pad * k_pad,
        transcendentals=0,
        bytes_accessed=(m_pad * k_pad * x_bytes + n_pad * k_pad * w_bytes
                        + n_pad * 4 + m_pad * n_pad * x_bytes))

    out = pl.pallas_call(
        _shared_head_kernel,
        out_shape=jax.ShapeDtypeStruct((m_pad, n_pad), x.dtype),
        grid_spec=pltpu.PrefetchScalarGridSpec(
            num_scalar_prefetch=0,
            grid=grid,
            in_specs=[
                pl.BlockSpec((tm, tk), lambda i, j, k: (i, k)),
                w_spec,
                pl.BlockSpec((1, tn), lambda i, j, k: (0, j)),
            ],
            out_specs=pl.BlockSpec((tm, tn), lambda i, j, k: (i, j)),
            scratch_shapes=[pltpu.VMEM((tm, tn), jnp.float32)],
        ),
        compiler_params=pltpu.CompilerParams(
            dimension_semantics=("parallel", "parallel", "arbitrary"),
            vmem_limit_bytes=_VMEM_LIMIT_BYTES),
        cost_estimate=cost,
    )(x2, w, b2)

    if (m_pad, n_pad) != (bs, tw):
        out = out[:bs, :tw]
    return out


@functools.partial(jax.jit, static_argnames=("k_cap_override",))
def flatten_head_individual(x, weights, biases, *, k_cap_override=None):
    """individual=True: per-var Flatten(start_dim=-2) -> Linear_i -> Dropout(0) -> stack(dim=1).

    x       : [bs, n_vars, d_model, patch_num]
    weights : [n_vars, target_window, nf_per]  per-var PyTorch Linear layout (bf16 recommended)
    biases  : [n_vars, target_window]
    returns : [bs, n_vars, target_window] in x.dtype
    """
    bs, n_vars, d_model, patch_num = x.shape
    nf_per = d_model * patch_num
    tw = weights.shape[1]
    assert weights.shape == (n_vars, tw, nf_per), (weights.shape, (n_vars, tw, nf_per))
    x_bytes = jnp.dtype(x.dtype).itemsize
    w_bytes = jnp.dtype(weights.dtype).itemsize

    # ---- tile plan ----
    k_cap = (k_cap_override if k_cap_override is not None
             else _k_tile_cap(bs, tw, x_bytes, w_bytes, x_bytes))
    if nf_per <= k_cap:
        tk, k_pad = nf_per, nf_per
    else:
        k_pad = _round_up(nf_per, _LANE)
        tk = _largest_tile_128(k_pad, k_cap)
    per_var = (2 * bs * tk * x_bytes + _W_BUFFERS * tw * tk * w_bytes
               + 2 * bs * tw * x_bytes + bs * tw * 4 + tw * 4)
    v_blk = _pick_v_blk(n_vars, per_var)

    # ---- operand prep ----
    # The weights (dominant HBM traffic) keep their native [n_vars, tw, nf_per] layout: no
    # transpose, no N padding.  Only the activations are re-laid-out to [n_vars, bs, *] so the
    # in-kernel contraction is a clean leading-batch matmul; that moves just
    # bs*n_vars*(nf_per+tw) elements -- negligible next to the per-variable weights.
    x_per = jnp.transpose(x.reshape(bs, n_vars, nf_per), (1, 0, 2))   # [n_vars, bs, nf_per]
    w = weights
    if k_pad != nf_per:
        # TODO(synk): in deployment pre-pad the weights once at load time.
        x_per = jnp.pad(x_per, ((0, 0), (0, 0), (0, k_pad - nf_per)))
        w = jnp.pad(w, ((0, 0), (0, 0), (0, k_pad - nf_per)))
    b3 = biases.reshape(n_vars, 1, tw)

    k_blocks = k_pad // tk
    grid = (n_vars // v_blk, k_blocks)                   # vars parallel, reduction last

    w_spec = pl.BlockSpec((v_blk, tw, tk), lambda v, k: (v, 0, k))
    if k_blocks >= 2:
        w_spec = pl.BlockSpec((v_blk, tw, tk), lambda v, k: (v, 0, k),
                              pipeline_mode=pl.Buffered(_W_BUFFERS))

    cost = pl.CostEstimate(
        flops=2 * n_vars * bs * tw * k_pad,
        transcendentals=0,
        bytes_accessed=(n_vars * bs * k_pad * x_bytes + n_vars * tw * k_pad * w_bytes
                        + n_vars * tw * 4 + n_vars * bs * tw * x_bytes))

    out = pl.pallas_call(
        _individual_head_kernel,
        out_shape=jax.ShapeDtypeStruct((n_vars, bs, tw), x.dtype),
        grid_spec=pltpu.PrefetchScalarGridSpec(
            num_scalar_prefetch=0,
            grid=grid,
            in_specs=[
                pl.BlockSpec((v_blk, bs, tk), lambda v, k: (v, 0, k)),
                w_spec,
                pl.BlockSpec((v_blk, 1, tw), lambda v, k: (v, 0, 0)),
            ],
            out_specs=pl.BlockSpec((v_blk, bs, tw), lambda v, k: (v, 0, 0)),
            scratch_shapes=[pltpu.VMEM((v_blk, bs, tw), jnp.float32)],
        ),
        compiler_params=pltpu.CompilerParams(
            dimension_semantics=("parallel", "arbitrary"),
            vmem_limit_bytes=_VMEM_LIMIT_BYTES),
        cost_estimate=cost,
    )(x_per, w, b3)

    return jnp.transpose(out, (1, 0, 2))                 # == torch.stack(out, dim=1)


# ----------------------------- references & checks ----------------------------- #

def _ref_shared(x, weight, bias):
    bs = x.shape[0]
    nf = math.prod(x.shape[1:])
    return jnp.dot(x.reshape(bs, nf), weight.astype(jnp.float32).T,
                   precision=jax.lax.Precision.HIGHEST) + bias


def _ref_individual(x, weights, biases):
    bs, n_vars = x.shape[:2]
    nf_per = x.shape[2] * x.shape[3]
    outs = [jnp.dot(x[:, i].reshape(bs, nf_per), weights[i].astype(jnp.float32).T,
                    precision=jax.lax.Precision.HIGHEST) + biases[i]
            for i in range(n_vars)]
    return jnp.stack(outs, axis=1)


def _check(name, got, ref, tol):
    assert got.shape == ref.shape, (name, got.shape, ref.shape)
    err = float(jnp.max(jnp.abs(got.astype(jnp.float32) - ref)))
    assert err <= tol, f"{name}: max abs err {err:.3e} > {tol:.1e}"


# ------------------------------------- main ------------------------------------ #

if __name__ == "__main__":
    key = jax.random.PRNGKey(0)

    def make_case(k, bs, n_vars, d_model, patch_num, tw):
        nf = n_vars * d_model * patch_num
        nf_per = d_model * patch_num
        ks = jax.random.split(k, 5)
        x = jax.random.normal(ks[0], (bs, n_vars, d_model, patch_num), jnp.float32)
        bnd_s = 1.0 / float(nf) ** 0.5                      # PyTorch Linear uniform init
        w_s = jax.random.uniform(ks[1], (tw, nf), jnp.float32, -bnd_s, bnd_s)
        b_s = jax.random.uniform(ks[2], (tw,), jnp.float32, -bnd_s, bnd_s)
        bnd_i = 1.0 / float(nf_per) ** 0.5
        w_i = jax.random.uniform(ks[3], (n_vars, tw, nf_per), jnp.float32, -bnd_i, bnd_i)
        b_i = jax.random.uniform(ks[4], (n_vars, tw), jnp.float32, -bnd_i, bnd_i)
        return x, w_s, b_s, w_i, b_i

    k1, k2 = jax.random.split(key)

    # --- case A: tiny shapes -> full-dim blocks; checked with f32 and bf16 weight streams ---
    x, w_s, b_s, w_i, b_i = make_case(k1, bs=2, n_vars=4, d_model=16, patch_num=8, tw=24)
    out = jax.block_until_ready(flatten_head_shared(x, w_s, b_s))
    _check("shared/f32", out, _ref_shared(x, w_s, b_s), 1e-4)
    out = jax.block_until_ready(flatten_head_individual(x, w_i, b_i))
    _check("individual/f32", out, _ref_individual(x, w_i, b_i), 1e-4)

    # Deployment path: weights stored/streamed in bf16 (cast once, outside the hot path).
    w_s16, w_i16 = w_s.astype(jnp.bfloat16), w_i.astype(jnp.bfloat16)
    out = jax.block_until_ready(flatten_head_shared(x, w_s16, b_s))
    _check("shared/bf16", out, _ref_shared(x, w_s16, b_s), 5e-4)
    out = jax.block_until_ready(flatten_head_individual(x, w_i16, b_i))
    _check("individual/bf16", out, _ref_individual(x, w_i16, b_i), 5e-4)

    # --- case B: exercises N tiling (tw=256 -> 2 lane-aligned N blocks), K tiling and the
    #     triple-buffered weight pipeline (k_cap_override shrinks the K tile), bf16 weights ---
    x, w_s, b_s, w_i, b_i = make_case(k2, bs=2, n_vars=4, d_model=64, patch_num=20, tw=256)
    w_s16, w_i16 = w_s.astype(jnp.bfloat16), w_i.astype(jnp.bfloat16)
    out = jax.block_until_ready(flatten_head_shared(x, w_s16, b_s, k_cap_override=256))
    _check("shared/bf16/tiled", out, _ref_shared(x, w_s16, b_s), 5e-4)
    out = jax.block_until_ready(flatten_head_individual(x, w_i16, b_i, k_cap_override=256))
    _check("individual/bf16/tiled", out, _ref_individual(x, w_i16, b_i), 5e-4)

    print("KERNEL_OK")
</pallas_src>

<mosaic_0001>
module attributes {stable_mosaic.version = 11 : i64} {
  func.func @_shared_head_kernel(%arg0: i32, %arg1: i32, %arg2: i32, %arg3: memref<2x512xf32, #tpu.memory_space<vmem>>, %arg4: memref<24x512xf32, #tpu.memory_space<vmem>>, %arg5: memref<1x24xf32, #tpu.memory_space<vmem>>, %arg6: memref<2x24xf32, #tpu.memory_space<vmem>>, %arg7: memref<2x24xf32, #tpu.memory_space<vmem>>) attributes {dimension_semantics = [#tpu.dimension_semantics<parallel>, #tpu.dimension_semantics<parallel>, #tpu.dimension_semantics<arbitrary>], iteration_bounds = array<i64: 1, 1, 1>, scalar_prefetch = 0 : i64, scratch_operands = 1 : i64, tpu.core_type = #tpu.core_type<tc>, window_params = [{transform_indices = @transform_0, window_bounds = array<i64: 2, 512>}, {transform_indices = @transform_1, window_bounds = array<i64: 24, 512>}, {transform_indices = @transform_2, window_bounds = array<i64: 1, 24>}, {transform_indices = @transform_3, window_bounds = array<i64: 2, 24>}]} {
    %c0_i32 = arith.constant 0 : i32
    %0 = arith.cmpi eq, %arg2, %c0_i32 : i32
    %1 = arith.extui %0 : i1 to i32
    %c0_i32_0 = arith.constant 0 : i32
    %2 = arith.cmpi ne, %1, %c0_i32_0 : i32
    scf.if %2 {
      %c0_10 = arith.constant 0 : index
      %c0_11 = arith.constant 0 : index
      %12 = vector.load %arg5[%c0_10, %c0_11] : memref<1x24xf32, #tpu.memory_space<vmem>>, vector<1x24xf32>
      %13 = vector.shape_cast %12 : vector<1x24xf32> to vector<1x24xf32>
      %14 = vector.broadcast %13 : vector<1x24xf32> to vector<2x24xf32>
      %c0_12 = arith.constant 0 : index
      %c0_13 = arith.constant 0 : index
      %15 = vector.load %arg7[%c0_12, %c0_13] : memref<2x24xf32, #tpu.memory_space<vmem>>, vector<2x24xf32>
      tpu.vector_store %arg7[%c0_12, %c0_13], %14 {strides = array<i32>} : memref<2x24xf32, #tpu.memory_space<vmem>>, vector<2x24xf32>,
    } else {
    }
    %c0 = arith.constant 0 : index
    %c0_1 = arith.constant 0 : index
    %3 = vector.load %arg3[%c0, %c0_1] : memref<2x512xf32, #tpu.memory_space<vmem>>, vector<2x512xf32>
    %c0_2 = arith.constant 0 : index
    %c0_3 = arith.constant 0 : index
    %4 = vector.load %arg4[%c0_2, %c0_3] : memref<24x512xf32, #tpu.memory_space<vmem>>, vector<24x512xf32>
    %c0_4 = arith.constant 0 : index
    %c0_5 = arith.constant 0 : index
    %5 = vector.load %arg7[%c0_4, %c0_5] : memref<2x24xf32, #tpu.memory_space<vmem>>, vector<2x24xf32>
    %cst = arith.constant dense<0.000000e+00> : vector<2x24xf32>
    %6 = tpu.matmul %3, %4, %cst {dimension_numbers = #tpu.dot_dimension_numbers<[1], [1], [0], [0], [0, 0, 1, 0], [], []>} : vector<2x512xf32>, vector<24x512xf32>, vector<2x24xf32> -> vector<2x24xf32>
    %7 = arith.addf %5, %6 : vector<2x24xf32>
    %c0_6 = arith.constant 0 : index
    %c0_7 = arith.constant 0 : index
    %8 = vector.load %arg7[%c0_6, %c0_7] : memref<2x24xf32, #tpu.memory_space<vmem>>, vector<2x24xf32>
    tpu.vector_store %arg7[%c0_6, %c0_7], %7 {strides = array<i32>} : memref<2x24xf32, #tpu.memory_space<vmem>>, vector<2x24xf32>,
    %c0_i32_8 = arith.constant 0 : i32
    %9 = arith.cmpi eq, %arg2, %c0_i32_8 : i32
    %10 = arith.extui %9 : i1 to i32
    %c0_i32_9 = arith.constant 0 : i32
    %11 = arith.cmpi ne, %10, %c0_i32_9 : i32
    scf.if %11 {
      %c0_10 = arith.constant 0 : index
      %c0_11 = arith.constant 0 : index
      %12 = vector.load %arg7[%c0_10, %c0_11] : memref<2x24xf32, #tpu.memory_space<vmem>>, vector<2x24xf32>
      %c0_12 = arith.constant 0 : index
      %c0_13 = arith.constant 0 : index
      %13 = vector.load %arg6[%c0_12, %c0_13] : memref<2x24xf32, #tpu.memory_space<vmem>>, vector<2x24xf32>
      tpu.vector_store %arg6[%c0_12, %c0_13], %12 {strides = array<i32>} : memref<2x24xf32, #tpu.memory_space<vmem>>, vector<2x24xf32>,
    } else {
    }
    return
  }
  func.func @transform_0(%arg0: i32, %arg1: i32, %arg2: i32) -> (i32, i32) {
    %c0_i32 = arith.constant 0 : i32
    return %arg0, %arg2 : i32, i32
  }
  func.func @transform_1(%arg0: i32, %arg1: i32, %arg2: i32) -> (i32, i32) {
    %c0_i32 = arith.constant 0 : i32
    return %arg1, %arg2 : i32, i32
  }
  func.func @transform_2(%arg0: i32, %arg1: i32, %arg2: i32) -> (i32, i32) {
    %c0_i32 = arith.constant 0 : i32
    %c0_i32_0 = arith.constant 0 : i32
    return %c0_i32, %arg1 : i32, i32
  }
  func.func @transform_3(%arg0: i32, %arg1: i32, %arg2: i32) -> (i32, i32) {
    %c0_i32 = arith.constant 0 : i32
    return %arg0, %arg1 : i32, i32
  }
}

</mosaic_0001>

<bundles_post_ra>
// kernel: flatten_head_shared.1
= control target key start
LH: loop header
LB: loop body
LE: loop exit
PB: predicated region body
PF: predicated region fallthrough
CT: control target
= control target key end

     0   :  { %v47_v3 = vlaneseq  ;;  %v262_v8 = vmov 1983009808   ;;  %s338_s0 = inlined_call_operand.vmem [shape: f32[2,512], index: 0, kind: input, shape index: {}]   ;;  %s339_s1 = inlined_call_operand.vmem [shape: f32[24,512], index: 1, kind: input, shape index: {}]   ;;  %s340_s2 = inlined_call_operand.vmem [shape: f32[1,24], index: 2, kind: input, shape index: {}]   ;;  %s341_s3 = inlined_call_operand.hbm [shape: f32[2,24], index: 3, kind: output, shape index: {}]  }
   0x1   :  { %v30_v0 = vld [vmem:[%s339_s1 + $0x8] sm:$0xff]  ;;  %v32_v2 = vld [vmem:[%s339_s1 + $0x18] sm:$0xff]  ;;  %v29_v6 = vld [vmem:[%s339_s1] sm:$0xff]  ;;  %v45_v9 = vunpack.c.l.s4 %v262_v8 }
   0x2   :  { %v34_v1 = vld [vmem:[%s339_s1 + $0x28] sm:$0xff]  ;;  %v36_v5 = vld [vmem:[%s339_s1 + $0x38] sm:$0xff]  ;;  %v33_v7 = vld [vmem:[%s339_s1 + $0x20] sm:$0xff]  ;;  %v48_v15 = vshrl.u32 %v47_v3, 7 }
   0x3   :  { %v227_v4 = vpack.c.bf16 %v34_v1, %v30_v0  ;;  %v231_v10 = vpack.c.bf16 %v36_v5, %v32_v2  ;;  %v229_v11 = vpack.c.bf16 %v33_v7, %v29_v6  ;;  %v31_v12 = vld [vmem:[%s339_s1 + $0x10] sm:$0xff]  ;;  %v38_v14 = vld [vmem:[%s339_s1 + $0x48] sm:$0xff]  ;;  %v40_v17 = vld [vmem:[%s339_s1 + $0x58] sm:$0xff]  ;;  %v46_v18 = vunpack.c.0.s8 %v45_v9 }
   0x4   :  { %v35_v13 = vld [vmem:[%s339_s1 + $0x30] sm:$0xff]  ;;  %v28_v19 = vld [vmem:[%s338_s0] sm:$0xff] }
   0x5   :  { %228 = vmatprep.subr.bf16.mxu0 %v227_v4  ;;  %v233_v16 = vpack.c.bf16 %v35_v13, %v31_v12  ;;  %232 = vmatprep.subr.bf16.mxu1 %v231_v10 }
   0x6   :  { %230 = vmatpush1.bf16.xpose.msra.mxu0 %v229_v11 }
   0x7   :  { %8 = vsyncpa [#allocation4], 0  ;;  %234 = vmatpush1.bf16.xpose.msra.mxu1 %v233_v16  ;;  %68 = vmatprep.subr.mxu0 %v38_v14  ;;  %v49_v20 = vsub.s32 %v46_v18, %v48_v15  ;;  %v43_v21 = vcombine.high %v28_v19, %v28_v19  ;;  %v37_v24 = vld [vmem:[%s339_s1 + $0x40] sm:$0xff]  ;;  %v39_v27 = vld [vmem:[%s339_s1 + $0x50] sm:$0xff]  ;;  %vm26_vm0 = vcmask 189440   ;;  %s263_s1 = smov [#allocation3]  }
   0x8   :  { %138 = vmatprep.subr.mxu1 %v40_v17  ;;  %v226_v28 = vld [vmem:[%s340_s2] ss:$0 sm:$0xff]  ;;  %s218_s12 = sshll.u32 %s263_s1, 4  ;;  %s219_s12 = int_to_ptr.vmem [resolvable:$true] %s218_s12 }
   0x9   :  { %v50_v22 = vrot.slane %v28_v19, %v49_v20  ;;  %v57_v23 = vrot.slane %v43_v21, %v49_v20  ;;  %27 = vst.msk [vmem:[#allocation2] sm:$0x3] %vm26_vm0, %v226_v28  ;;  %s238_s13 = scalar_lea.vmem %s219_s12, 32  ;;  %p243_p1 = scmp.lt.s32.totalorder %s219_s12, %s219_s12 }
   0xa   :  { %p239_p0 = scmp.ne.s32.totalorder %s219_s12, %s238_s13  ;;  %p244_p2 = scmp.lt.s32.totalorder %s238_s13, %s238_s13 }
   0xb   :  { %v58_v25 = vcombine.high %v50_v22, %v50_v22  ;;  %v59_v26 = vcombine.high %v57_v23, %v57_v23 }
   0xc   :  { %p245_p3 = por %p244_p2, %p243_p1 }
   0xd   :  { %128 = vmatprep.mubr.f32.mxu0 %v58_v25  ;;  %198 = vmatprep.mubr.f32.mxu1 %v59_v26 }
   0xe   :  { %69 = vmatpush1.xpose.msra.mxu0 %v37_v24  ;;  %p246_p4 = pnand %p245_p3, %p239_p0 }
   0xf   :  { %139 = vmatpush1.xpose.msra.mxu1 %v39_v27 }
  0x10   :  { %v41_v30 = vld [vmem:[#allocation2] sm:$0x3] }
  0x11   :  { %129 = vmatmul.mubr.f32.vlgmr.msra.gmra.mrb[0].mxu0 %v50_v22 }
  0x12   :  { %199 = vmatmul.mubr.f32.vlgmr.msra.gmra.mrb[0].mxu1 %v57_v23 }
  0xe4   :  { %v130_v29 = vpop.f32.mrb[0].mxu0 }
  0xe5   :  { %v200_v31 = vpop.f32.mrb[0].mxu1  ;;  %v132_v32 = vpop.f32.mrb[1].mxu0 }
  0xe6   :  { %v201_v33 = vadd.f32 %v200_v31, %v130_v29  ;;  %v202_v34 = vpop.f32.mrb[1].mxu1 }
  0xe8   :  { %v204_v35 = vadd.f32 %v201_v33, %v41_v30 }
  0xea   :  { %206 = vst.msk [vmem:[#allocation2] sm:$0x3] %vm26_vm0, %v204_v35 }
  0xf1   :  { %v210_v36 = vld [vmem:[#allocation2] sm:$0x3] }
  0xf2   :  { %211 = vst.msk [vmem:[#allocation3] sm:$0x3] %vm26_vm0, %v210_v36 }
  0xf3   :  { %249 = shalt.err (!%p246_p4)
}
  0xf4   :  { %s250_s15 = scalar_lea.hbm %s341_s3, 32 }
  0xf5   :  { %p251_p5 = scmp.ne.s32.totalorder %s341_s3, %s250_s15  ;;  %p254_p6 = scmp.lt.u32.totalorder %s250_s15, %s341_s3 }
  0xf7   :  { %p256_p7 = pnand %p254_p6, %p251_p5 }
  0xf9   :  { %259 = shalt.err (!%p256_p7)
}
  0xfa   :  { %221 = dma.vmem_to_hbm [thread:$0]  %s219_s12, 32, %s341_s3, [#allocation4]  }
  0xfb   :  { %260 = dma.done.wait [#allocation4], 32  }
  0xfc   :  { %261 = vsyncadd [#allocation4], 4294967264 }
  0xfd   :  { %225 = vsyncpa [#allocation4], 1 }

</bundles_post_ra>
